<compile_context>
chip_gen: v6e
topology: v6e:2x2x1
jax: 0.10.0
libtpu: 0.0.40
codegen_flags: <defaults>
</compile_context>

<pallas_src>
import functools

import jax
import jax.numpy as jnp
from jax.experimental import pallas as pl
from jax.experimental.pallas import tpu as pltpu


# -----------------------------------------------------------------------------
# Fused Pallas kernel
# -----------------------------------------------------------------------------
def _fused_gcn_kernel(a_ref, w_ref, b_ref, x_ref, p_ref, wl_ref, bl_ref,
                      o_ref, h_ref, xw_ref, acc_ref):
    l = pl.program_id(0)                 # layer index
    i = pl.program_id(1)                 # node-row tile of A_hat
    k = pl.program_id(2)                 # reduction tile over N (cols of A_hat)
    n_l = pl.num_programs(0)
    n_i = pl.num_programs(1)
    n_k = pl.num_programs(2)
    tm, tk = a_ref.shape

    # ---- layer prologue: XW = h_l @ W_l, computed once per layer ------------
    @pl.when(jnp.logical_and(i == 0, k == 0))
    def _():
        @pl.when(l == 0)
        def _():
            h_ref[...] = x_ref[...]       # zero-padded input node features

        xw_ref[...] = jnp.dot(h_ref[...].astype(jnp.bfloat16), w_ref[...],
                              preferred_element_type=jnp.float32)

    # ---- tiled reduction: acc += A_hat[i, k] @ XW[k, :] ---------------------
    @pl.when(k == 0)
    def _():
        acc_ref[...] = jnp.zeros_like(acc_ref)

    k_off = pl.multiple_of(k * tk, tk)
    acc_ref[...] += jnp.dot(a_ref[...],
                            xw_ref[pl.ds(k_off, tk), :].astype(jnp.bfloat16),
                            preferred_element_type=jnp.float32)

    # ---- reduction epilogue: bias + ReLU, update activation row tile --------
    @pl.when(k == n_k - 1)
    def _():
        i_off = pl.multiple_of(i * tm, tm)
        h_ref[pl.ds(i_off, tm), :] = jnp.maximum(acc_ref[...] + b_ref[...], 0.0)
        # (eval-mode Dropout == identity here)

    # ---- final grid step: global_mean_pool (P @ h) + linear head ------------
    is_last = jnp.logical_and(
        l == n_l - 1, jnp.logical_and(i == n_i - 1, k == n_k - 1))

    @pl.when(is_last)
    def _():
        pooled = jnp.dot(p_ref[...], h_ref[...],
                         preferred_element_type=jnp.float32)
        o_ref[...] = (jnp.dot(pooled, wl_ref[...],
                              preferred_element_type=jnp.float32) + bl_ref[...])


# -----------------------------------------------------------------------------
# Wrapper: padding + pallas_call
# -----------------------------------------------------------------------------
def _round_up(x, m):
    return ((x + m - 1) // m) * m


def _pad2d(a, rows, cols):
    return jnp.pad(a, ((0, rows - a.shape[0]), (0, cols - a.shape[1])))


@functools.partial(jax.jit, static_argnames=("tile_n",))
def gcn_classifier_forward_fused(x, a_hat, pool_mat, gcn_weights, gcn_biases,
                                 lin_w, lin_b, *, tile_n=128):
    """Fused 5-layer GCN + mean pool + linear head.

    x: [N, F] node features, a_hat: [N, N] normalized adjacency,
    pool_mat: [B, N] mean-pool matrix, gcn_weights[l]: [F_in_l, H],
    lin_w: [H, C] (already transposed from PyTorch's [C, H]), lin_b: [C].
    """
    n, f_in = x.shape
    hidden = gcn_weights[-1].shape[1]
    n_cls = lin_w.shape[1]
    n_graphs = pool_mat.shape[0]
    n_layers = len(gcn_weights)

    h_pad = _round_up(hidden, 128)          # lane-dense hidden width
    c_pad = _round_up(n_cls, 128)           # lane-dense class width
    n_pad = _round_up(n, tile_n)            # node dim, multiple of tile
    b_pad = _round_up(n_graphs, 8)          # sublane-aligned graph dim
    assert f_in <= h_pad, "input feature width must fit the padded hidden dim"

    # Zero-padding is semantically inert: padded A rows/cols are 0, padded
    # weight rows/cols are 0, padded pool entries are 0.
    x_p = _pad2d(x.astype(jnp.float32), n_pad, h_pad)
    a_p = _pad2d(a_hat.astype(jnp.float32), n_pad, n_pad).astype(jnp.bfloat16)
    p_p = _pad2d(pool_mat.astype(jnp.float32), b_pad, n_pad)

    w_stack = jnp.stack(
        [_pad2d(w.astype(jnp.float32), h_pad, h_pad) for w in gcn_weights]
    ).astype(jnp.bfloat16)                                   # [L, H_pad, H_pad]
    b_stack = jnp.stack(
        [jnp.pad(b.astype(jnp.float32), (0, h_pad - b.shape[0]))[None, :]
         for b in gcn_biases])                               # [L, 1, H_pad]

    wl_p = _pad2d(lin_w.astype(jnp.float32), h_pad, c_pad)   # [H_pad, C_pad]
    bl_p = jnp.pad(lin_b.astype(jnp.float32), (0, c_pad - n_cls))[None, :]

    tm = tk = tile_n
    grid = (n_layers, n_pad // tm, n_pad // tk)

    out = pl.pallas_call(
        _fused_gcn_kernel,
        out_shape=jax.ShapeDtypeStruct((b_pad, c_pad), jnp.float32),
        grid_spec=pltpu.PrefetchScalarGridSpec(
            num_scalar_prefetch=0,
            grid=grid,
            in_specs=[
                # A_hat: tiled + pipelined, the only array with real HBM traffic
                pl.BlockSpec((tm, tk), lambda l, i, k: (i, k)),
                # per-layer GCN weight / bias (layer dim squeezed)
                pl.BlockSpec((None, h_pad, h_pad), lambda l, i, k: (l, 0, 0)),
                pl.BlockSpec((None, 1, h_pad), lambda l, i, k: (l, 0, 0)),
                # small arrays kept resident for the whole grid
                pl.BlockSpec((n_pad, h_pad), lambda l, i, k: (0, 0)),   # X
                pl.BlockSpec((b_pad, n_pad), lambda l, i, k: (0, 0)),   # P
                pl.BlockSpec((h_pad, c_pad), lambda l, i, k: (0, 0)),   # W_lin
                pl.BlockSpec((1, c_pad), lambda l, i, k: (0, 0)),       # b_lin
            ],
            out_specs=pl.BlockSpec((b_pad, c_pad), lambda l, i, k: (0, 0)),
            scratch_shapes=[
                pltpu.VMEM((n_pad, h_pad), jnp.float32),   # h  (resident activation)
                pltpu.VMEM((n_pad, h_pad), jnp.float32),   # XW (per-layer)
                pltpu.VMEM((tm, h_pad), jnp.float32),      # f32 accumulator
            ],
        ),
        compiler_params=pltpu.CompilerParams(
            # Every axis shares the VMEM-resident activation h, so all axes
            # must stay sequential ("arbitrary"); the k reduction is last.
            # (Dual-TC sharding on v7x would need a per-core copy of h.)
            dimension_semantics=("arbitrary", "arbitrary", "arbitrary"),
            vmem_limit_bytes=48 * 1024 * 1024,
        ),
    )(a_p, w_stack, b_stack, x_p, p_p, wl_p, bl_p)

    return out[:n_graphs, :n_cls]


# -----------------------------------------------------------------------------
# Graph preprocessing (plain JAX glue)
# -----------------------------------------------------------------------------
def build_normalized_adjacency(edge_index, num_nodes):
    """D^{-1/2} (A + I) D^{-1/2}; self-loops added only where missing."""
    src, dst = edge_index[0], edge_index[1]
    a = jnp.zeros((num_nodes, num_nodes), dtype=jnp.float32)
    a = a.at[src, dst].set(1.0)
    a = jnp.maximum(a, jnp.eye(num_nodes, dtype=jnp.float32))  # add_remaining_self_loops
    deg = jnp.sum(a, axis=1)
    d_inv_sqrt = jnp.where(deg > 0, 1.0 / jnp.sqrt(deg), 0.0)
    return d_inv_sqrt[:, None] * a * d_inv_sqrt[None, :]


def build_pool_matrix(batch_index, num_graphs, num_nodes):
    """P[b, n] = 1/|graph b| if node n belongs to graph b else 0."""
    one_hot = (batch_index[None, :] == jnp.arange(num_graphs)[:, None]).astype(
        jnp.float32)
    counts = jnp.maximum(jnp.sum(one_hot, axis=1, keepdims=True), 1.0)
    return one_hot / counts


def glorot(key, shape):
    fan_in, fan_out = shape
    limit = jnp.sqrt(6.0 / (fan_in + fan_out))
    return jax.random.uniform(key, shape, jnp.float32, -limit, limit)


# -----------------------------------------------------------------------------
# Main
# -----------------------------------------------------------------------------
if __name__ == "__main__":
    NBR_FEATURES = 3
    NBR_CLASSES = 2
    HIDDEN = 128          # lane-aligned small stand-in for hidden_layer_size=256
    NUM_NODES = 200       # padded to 256 inside the wrapper
    NUM_GRAPHS = 2
    NUM_EDGES = 400
    NUM_LAYERS = 5

    key = jax.random.PRNGKey(0)
    k_x, k_e, *k_w = jax.random.split(key, 2 + 2 * NUM_LAYERS + 1)

    # Deterministic synthetic graph batch.
    x = jax.random.normal(k_x, (NUM_NODES, NBR_FEATURES), jnp.float32)
    src = jax.random.randint(k_e, (NUM_EDGES,), 0, NUM_NODES)
    dst = jnp.roll(src, 1)
    edge_index = jnp.stack(                      # symmetric (undirected) edges
        [jnp.concatenate([src, dst]), jnp.concatenate([dst, src])], axis=0)
    batch_index = jnp.concatenate(
        [jnp.zeros(NUM_NODES // 2, jnp.int32),
         jnp.ones(NUM_NODES - NUM_NODES // 2, jnp.int32)])

    # Deterministic parameter init (shapes follow the module's __init__).
    layer_dims = [(NBR_FEATURES, HIDDEN)] + [(HIDDEN, HIDDEN)] * (NUM_LAYERS - 1)
    gcn_weights, gcn_biases = [], []
    for li, dims in enumerate(layer_dims):
        gcn_weights.append(glorot(k_w[2 * li], dims))
        gcn_biases.append(jnp.zeros((dims[1],), jnp.float32))
    lin_w = glorot(k_w[2 * NUM_LAYERS], (HIDDEN, NBR_CLASSES))  # [in, out] = W^T
    lin_b = jnp.zeros((NBR_CLASSES,), jnp.float32)

    a_hat = build_normalized_adjacency(edge_index, NUM_NODES)
    pool_mat = build_pool_matrix(batch_index, NUM_GRAPHS, NUM_NODES)

    logits = gcn_classifier_forward_fused(
        x, a_hat, pool_mat, gcn_weights, gcn_biases, lin_w, lin_b, tile_n=128)
    logits = jax.block_until_ready(logits)

    assert logits.shape == (NUM_GRAPHS, NBR_CLASSES)
    assert bool(jnp.all(jnp.isfinite(logits)))
    print("KERNEL_OK")
</pallas_src>

<mosaic_0001>
module attributes {stable_mosaic.version = 11 : i64} {
  func.func @_fused_gcn_kernel(%arg0: i32, %arg1: i32, %arg2: i32, %arg3: memref<128x128xbf16, #tpu.memory_space<vmem>>, %arg4: memref<1x128x128xbf16, #tpu.memory_space<vmem>>, %arg5: memref<1x1x128xf32, #tpu.memory_space<vmem>>, %arg6: memref<256x128xf32, #tpu.memory_space<vmem>>, %arg7: memref<8x256xf32, #tpu.memory_space<vmem>>, %arg8: memref<128x128xf32, #tpu.memory_space<vmem>>, %arg9: memref<1x128xf32, #tpu.memory_space<vmem>>, %arg10: memref<8x128xf32, #tpu.memory_space<vmem>>, %arg11: memref<256x128xf32, #tpu.memory_space<vmem>>, %arg12: memref<256x128xf32, #tpu.memory_space<vmem>>, %arg13: memref<128x128xf32, #tpu.memory_space<vmem>>) attributes {dimension_semantics = [#tpu.dimension_semantics<arbitrary>, #tpu.dimension_semantics<arbitrary>, #tpu.dimension_semantics<arbitrary>], iteration_bounds = array<i64: 5, 2, 2>, scalar_prefetch = 0 : i64, scratch_operands = 3 : i64, tpu.core_type = #tpu.core_type<tc>, window_params = [{transform_indices = @transform_0, window_bounds = array<i64: 128, 128>}, {transform_indices = @transform_1, window_bounds = array<i64: 1, 128, 128>}, {transform_indices = @transform_2, window_bounds = array<i64: 1, 1, 128>}, {pipeline_mode = #tpu.pipeline_mode<synchronous>, transform_indices = @transform_3, window_bounds = array<i64: 256, 128>}, {pipeline_mode = #tpu.pipeline_mode<synchronous>, transform_indices = @transform_4, window_bounds = array<i64: 8, 256>}, {pipeline_mode = #tpu.pipeline_mode<synchronous>, transform_indices = @transform_5, window_bounds = array<i64: 128, 128>}, {pipeline_mode = #tpu.pipeline_mode<synchronous>, transform_indices = @transform_6, window_bounds = array<i64: 1, 128>}, {pipeline_mode = #tpu.pipeline_mode<synchronous>, transform_indices = @transform_7, window_bounds = array<i64: 8, 128>}]} {
    %c0_i32 = arith.constant 0 : i32
    %0 = arith.cmpi eq, %arg1, %c0_i32 : i32
    %c0_i32_0 = arith.constant 0 : i32
    %1 = arith.cmpi eq, %arg2, %c0_i32_0 : i32
    %2 = arith.andi %0, %1 : i1
    %3 = arith.extui %2 : i1 to i32
    %c0_i32_1 = arith.constant 0 : i32
    %4 = arith.cmpi ne, %3, %c0_i32_1 : i32
    scf.if %4 {
      %c0_i32_14 = arith.constant 0 : i32
      %28 = arith.cmpi eq, %arg0, %c0_i32_14 : i32
      %29 = arith.extui %28 : i1 to i32
      %c0_i32_15 = arith.constant 0 : i32
      %30 = arith.cmpi ne, %29, %c0_i32_15 : i32
      scf.if %30 {
        %c0_24 = arith.constant 0 : index
        %c0_25 = arith.constant 0 : index
        %37 = vector.load %arg6[%c0_24, %c0_25] : memref<256x128xf32, #tpu.memory_space<vmem>>, vector<256x128xf32>
        %c0_26 = arith.constant 0 : index
        %c0_27 = arith.constant 0 : index
        %38 = vector.load %arg11[%c0_26, %c0_27] : memref<256x128xf32, #tpu.memory_space<vmem>>, vector<256x128xf32>
        tpu.vector_store %arg11[%c0_26, %c0_27], %37 {strides = array<i32>} : memref<256x128xf32, #tpu.memory_space<vmem>>, vector<256x128xf32>,
      } else {
      }
      %c0_16 = arith.constant 0 : index
      %c0_17 = arith.constant 0 : index
      %31 = vector.load %arg11[%c0_16, %c0_17] : memref<256x128xf32, #tpu.memory_space<vmem>>, vector<256x128xf32>
      %32 = arith.truncf %31 : vector<256x128xf32> to vector<256x128xbf16>
      %c0_18 = arith.constant 0 : index
      %c0_19 = arith.constant 0 : index
      %c0_20 = arith.constant 0 : index
      %33 = vector.load %arg4[%c0_18, %c0_19, %c0_20] : memref<1x128x128xbf16, #tpu.memory_space<vmem>>, vector<1x128x128xbf16>
      %34 = vector.shape_cast %33 : vector<1x128x128xbf16> to vector<128x128xbf16>
      %cst_21 = arith.constant dense<0.000000e+00> : vector<256x128xf32>
      %35 = tpu.matmul %32, %34, %cst_21 {dimension_numbers = #tpu.dot_dimension_numbers<[1], [0], [0], [1], [0, 0, 1, 1], [], []>} : vector<256x128xbf16>, vector<128x128xbf16>, vector<256x128xf32> -> vector<256x128xf32>
      %c0_22 = arith.constant 0 : index
      %c0_23 = arith.constant 0 : index
      %36 = vector.load %arg12[%c0_22, %c0_23] : memref<256x128xf32, #tpu.memory_space<vmem>>, vector<256x128xf32>
      tpu.vector_store %arg12[%c0_22, %c0_23], %35 {strides = array<i32>} : memref<256x128xf32, #tpu.memory_space<vmem>>, vector<256x128xf32>,
    } else {
    }
    %c0_i32_2 = arith.constant 0 : i32
    %5 = arith.cmpi eq, %arg2, %c0_i32_2 : i32
    %6 = arith.extui %5 : i1 to i32
    %c0_i32_3 = arith.constant 0 : i32
    %7 = arith.cmpi ne, %6, %c0_i32_3 : i32
    scf.if %7 {
      %cst_14 = arith.constant 0.000000e+00 : f32
      %28 = vector.broadcast %cst_14 : f32 to vector<128x128xf32>
      %c0_15 = arith.constant 0 : index
      %c0_16 = arith.constant 0 : index
      %29 = vector.load %arg13[%c0_15, %c0_16] : memref<128x128xf32, #tpu.memory_space<vmem>>, vector<128x128xf32>
      tpu.vector_store %arg13[%c0_15, %c0_16], %28 {strides = array<i32>} : memref<128x128xf32, #tpu.memory_space<vmem>>, vector<128x128xf32>,
    } else {
    }
    %c128_i32 = arith.constant 128 : i32
    %8 = arith.muli %arg2, %c128_i32 : i32
    %9 = tpu.assume_multiple %8, 128 : i32
    %c0 = arith.constant 0 : index
    %c0_4 = arith.constant 0 : index
    %10 = vector.load %arg13[%c0, %c0_4] : memref<128x128xf32, #tpu.memory_space<vmem>>, vector<128x128xf32>
    %c0_5 = arith.constant 0 : index
    %c0_6 = arith.constant 0 : index
    %11 = vector.load %arg3[%c0_5, %c0_6] : memref<128x128xbf16, #tpu.memory_space<vmem>>, vector<128x128xbf16>
    %12 = arith.index_cast %9 : i32 to index
    %c0_7 = arith.constant 0 : index
    %13 = vector.load %arg12[%12, %c0_7] : memref<256x128xf32, #tpu.memory_space<vmem>>, vector<128x128xf32>
    %14 = arith.truncf %13 : vector<128x128xf32> to vector<128x128xbf16>
    %cst = arith.constant dense<0.000000e+00> : vector<128x128xf32>
    %15 = tpu.matmul %11, %14, %cst {dimension_numbers = #tpu.dot_dimension_numbers<[1], [0], [0], [1], [0, 0, 1, 1], [], []>} : vector<128x128xbf16>, vector<128x128xbf16>, vector<128x128xf32> -> vector<128x128xf32>
    %16 = arith.addf %10, %15 : vector<128x128xf32>
    %c0_8 = arith.constant 0 : index
    %c0_9 = arith.constant 0 : index
    %17 = vector.load %arg13[%c0_8, %c0_9] : memref<128x128xf32, #tpu.memory_space<vmem>>, vector<128x128xf32>
    tpu.vector_store %arg13[%c0_8, %c0_9], %16 {strides = array<i32>} : memref<128x128xf32, #tpu.memory_space<vmem>>, vector<128x128xf32>,
    %c1_i32 = arith.constant 1 : i32
    %18 = arith.cmpi eq, %arg2, %c1_i32 : i32
    %19 = arith.extui %18 : i1 to i32
    %c0_i32_10 = arith.constant 0 : i32
    %20 = arith.cmpi ne, %19, %c0_i32_10 : i32
    scf.if %20 {
      %c128_i32_14 = arith.constant 128 : i32
      %28 = arith.muli %arg1, %c128_i32_14 : i32
      %29 = tpu.assume_multiple %28, 128 : i32
      %c0_15 = arith.constant 0 : index
      %c0_16 = arith.constant 0 : index
      %30 = vector.load %arg13[%c0_15, %c0_16] : memref<128x128xf32, #tpu.memory_space<vmem>>, vector<128x128xf32>
      %c0_17 = arith.constant 0 : index
      %c0_18 = arith.constant 0 : index
      %c0_19 = arith.constant 0 : index
      %31 = vector.load %arg5[%c0_17, %c0_18, %c0_19] : memref<1x1x128xf32, #tpu.memory_space<vmem>>, vector<1x1x128xf32>
      %32 = vector.shape_cast %31 : vector<1x1x128xf32> to vector<1x128xf32>
      %33 = vector.broadcast %32 : vector<1x128xf32> to vector<128x128xf32>
      %34 = arith.addf %30, %33 : vector<128x128xf32>
      %cst_20 = arith.constant 0.000000e+00 : f32
      %35 = vector.broadcast %cst_20 : f32 to vector<128x128xf32>
      %36 = arith.maximumf %34, %35 : vector<128x128xf32>
      %37 = arith.index_cast %29 : i32 to index
      %c0_21 = arith.constant 0 : index
      %38 = vector.load %arg11[%37, %c0_21] : memref<256x128xf32, #tpu.memory_space<vmem>>, vector<128x128xf32>
      tpu.vector_store %arg11[%37, %c0_21], %36 {strides = array<i32>} : memref<256x128xf32, #tpu.memory_space<vmem>>, vector<128x128xf32>,
    } else {
    }
    %c4_i32 = arith.constant 4 : i32
    %21 = arith.cmpi eq, %arg0, %c4_i32 : i32
    %c1_i32_11 = arith.constant 1 : i32
    %22 = arith.cmpi eq, %arg1, %c1_i32_11 : i32
    %c1_i32_12 = arith.constant 1 : i32
    %23 = arith.cmpi eq, %arg2, %c1_i32_12 : i32
    %24 = arith.andi %22, %23 : i1
    %25 = arith.andi %21, %24 : i1
    %26 = arith.extui %25 : i1 to i32
    %c0_i32_13 = arith.constant 0 : i32
    %27 = arith.cmpi ne, %26, %c0_i32_13 : i32
    scf.if %27 {
      %c0_14 = arith.constant 0 : index
      %c0_15 = arith.constant 0 : index
      %28 = vector.load %arg7[%c0_14, %c0_15] : memref<8x256xf32, #tpu.memory_space<vmem>>, vector<8x256xf32>
      %c0_16 = arith.constant 0 : index
      %c0_17 = arith.constant 0 : index
      %29 = vector.load %arg11[%c0_16, %c0_17] : memref<256x128xf32, #tpu.memory_space<vmem>>, vector<256x128xf32>
      %cst_18 = arith.constant dense<0.000000e+00> : vector<8x128xf32>
      %30 = tpu.matmul %28, %29, %cst_18 {dimension_numbers = #tpu.dot_dimension_numbers<[1], [0], [0], [1], [0, 0, 1, 1], [], []>} : vector<8x256xf32>, vector<256x128xf32>, vector<8x128xf32> -> vector<8x128xf32>
      %c0_19 = arith.constant 0 : index
      %c0_20 = arith.constant 0 : index
      %31 = vector.load %arg8[%c0_19, %c0_20] : memref<128x128xf32, #tpu.memory_space<vmem>>, vector<128x128xf32>
      %cst_21 = arith.constant dense<0.000000e+00> : vector<8x128xf32>
      %32 = tpu.matmul %30, %31, %cst_21 {dimension_numbers = #tpu.dot_dimension_numbers<[1], [0], [0], [1], [0, 0, 1, 1], [], []>} : vector<8x128xf32>, vector<128x128xf32>, vector<8x128xf32> -> vector<8x128xf32>
      %c0_22 = arith.constant 0 : index
      %c0_23 = arith.constant 0 : index
      %33 = vector.load %arg9[%c0_22, %c0_23] : memref<1x128xf32, #tpu.memory_space<vmem>>, vector<1x128xf32>
      %34 = vector.broadcast %33 : vector<1x128xf32> to vector<8x128xf32>
      %35 = arith.addf %32, %34 : vector<8x128xf32>
      %c0_24 = arith.constant 0 : index
      %c0_25 = arith.constant 0 : index
      %36 = vector.load %arg10[%c0_24, %c0_25] : memref<8x128xf32, #tpu.memory_space<vmem>>, vector<8x128xf32>
      tpu.vector_store %arg10[%c0_24, %c0_25], %35 {strides = array<i32>} : memref<8x128xf32, #tpu.memory_space<vmem>>, vector<8x128xf32>,
    } else {
    }
    return
  }
  func.func @transform_0(%arg0: i32, %arg1: i32, %arg2: i32) -> (i32, i32) {
    %c0_i32 = arith.constant 0 : i32
    return %arg1, %arg2 : i32, i32
  }
  func.func @transform_1(%arg0: i32, %arg1: i32, %arg2: i32) -> (i32, i32, i32) {
    %c0_i32 = arith.constant 0 : i32
    %c0_i32_0 = arith.constant 0 : i32
    %c0_i32_1 = arith.constant 0 : i32
    return %arg0, %c0_i32, %c0_i32_0 : i32, i32, i32
  }
  func.func @transform_2(%arg0: i32, %arg1: i32, %arg2: i32) -> (i32, i32, i32) {
    %c0_i32 = arith.constant 0 : i32
    %c0_i32_0 = arith.constant 0 : i32
    %c0_i32_1 = arith.constant 0 : i32
    return %arg0, %c0_i32, %c0_i32_0 : i32, i32, i32
  }
  func.func @transform_3(%arg0: i32, %arg1: i32, %arg2: i32) -> (i32, i32) {
    %c0_i32 = arith.constant 0 : i32
    %c0_i32_0 = arith.constant 0 : i32
    %c0_i32_1 = arith.constant 0 : i32
    return %c0_i32, %c0_i32_0 : i32, i32
  }
  func.func @transform_4(%arg0: i32, %arg1: i32, %arg2: i32) -> (i32, i32) {
    %c0_i32 = arith.constant 0 : i32
    %c0_i32_0 = arith.constant 0 : i32
    %c0_i32_1 = arith.constant 0 : i32
    return %c0_i32, %c0_i32_0 : i32, i32
  }
  func.func @transform_5(%arg0: i32, %arg1: i32, %arg2: i32) -> (i32, i32) {
    %c0_i32 = arith.constant 0 : i32
    %c0_i32_0 = arith.constant 0 : i32
    %c0_i32_1 = arith.constant 0 : i32
    return %c0_i32, %c0_i32_0 : i32, i32
  }
  func.func @transform_6(%arg0: i32, %arg1: i32, %arg2: i32) -> (i32, i32) {
    %c0_i32 = arith.constant 0 : i32
    %c0_i32_0 = arith.constant 0 : i32
    %c0_i32_1 = arith.constant 0 : i32
    return %c0_i32, %c0_i32_0 : i32, i32
  }
  func.func @transform_7(%arg0: i32, %arg1: i32, %arg2: i32) -> (i32, i32) {
    %c0_i32 = arith.constant 0 : i32
    %c0_i32_0 = arith.constant 0 : i32
    %c0_i32_1 = arith.constant 0 : i32
    return %c0_i32, %c0_i32_0 : i32, i32
  }
}

</mosaic_0001>

<bundles_post_ra>
// kernel: gcn_classifier_forward_fused.1
= control target key start
LH: loop header
LB: loop body
LE: loop exit
PB: predicated region body
PF: predicated region fallthrough
CT: control target
= control target key end

     0   :  { %s2284_s0 = inlined_call_operand.vmem [shape: bf16[256,256], index: 0, kind: input, shape index: {}]   ;;  %s2285_s1 = inlined_call_operand.vmem [shape: bf16[5,128,128], index: 1, kind: input, shape index: {}]   ;;  %s2286_s2 = inlined_call_operand.vmem [shape: f32[5,1,128], index: 2, kind: input, shape index: {}]   ;;  %s2287_s3 = inlined_call_operand.vmem [shape: f32[256,128], index: 3, kind: input, shape index: {}]   ;;  %s2288_s4 = inlined_call_operand.vmem [shape: f32[8,256], index: 4, kind: input, shape index: {}]   ;;  %s2289_s5 = inlined_call_operand.vmem [shape: f32[128,128], index: 5, kind: input, shape index: {}]   ;;  %s2290_s6 = inlined_call_operand.vmem [shape: f32[1,128], index: 6, kind: input, shape index: {}]   ;;  %s2291_s7 = inlined_call_operand.vmem [shape: f32[8,128], index: 7, kind: output, shape index: {}]  }
   0x1   :  { %2293 = sst [smem:[#allocation8_spill]] %s2284_s0 }
   0x2   :  { %s1904_s24 = smov 0   ;;  %s1906_s25 = smov 0  }
   0x3   :  { %s1908_s26 = smov 0   ;;  %s1910_s27 = smov 0  }
   0x4   :  { %s1912_s28 = smov 0   ;;  %s1914_s29 = smov 0  }
   0x5   :  { %s1916_s30 = smov 0   ;;  %s1918_s8 = smov 0  }
   0x6   :  { %s1920_s9 = smov 0  }
   0x7 LB: > { %s29_s10 = sadd.s32 1, %s1847_s29  ;;  %s32_s11 = sadd.s32 1, %s1851_s30  ;;  %s1859_s9 = sphi %s1920_s9, %s17_s9   ;;  %s1855_s8 = sphi %s1918_s8, %s2306_s8   ;;  %s1851_s30 = sphi %s1916_s30, %s2305_s30   ;;  %s1847_s29 = sphi %s1914_s29, %s2304_s29   ;;  %s1843_s28 = sphi %s1912_s28, %s2303_s28   ;;  %s1839_s27 = sphi %s1910_s27, %s2302_s27   ;;  %s1835_s26 = sphi %s1908_s26, %s2301_s26   ;;  %s1831_s25 = sphi %s1906_s25, %s2300_s25   ;;  %s1827_s24 = sphi %s1904_s24, %s2299_s24  }
   0x8   : > { %p30_p0 = scmp.ge.s32.totalorder %s29_s10, 2  ;;  %p52_p1 = scmp.ne.s32.totalorder %s1831_s25, %s1827_s24 }
   0x9   : > { %p53_p2 = scmp.eq.s32.totalorder %s1859_s9, 0  ;;  %s36_s12 = sadd.s32 1, %s1855_s8 }
   0xa   : > { %s2308_s10 = smov (%p30_p0, %s29_s10), 0  ;;  %s2310_s11 = smov (!%p30_p0, %s32_s11), %s1851_s30 }
   0xb   : > { %p34_p3 = scmp.ge.s32.totalorder %s2310_s11, 2  ;;  %s41_s13 = ssub.s32 %s1847_s29, %s2308_s10 }
   0xc   : > { %p54_p4 = por %p53_p2, %p52_p1  ;;  %s45_s15 = sadd.s32 1, %s1831_s25 }
   0xd   : > { %s2312_s11 = smov (%p34_p3, %s2310_s11), 0  ;;  %s2314_s12 = smov (!%p34_p3, %s36_s12), %s1855_s8 }
   0xe   : > { %2294 = sst [smem:[#allocation6_spill]] %s2312_s11  ;;  %s40_s14 = ssub.s32 %s1851_s30, %s2312_s11 }
   0xf   : > { %p38_p5 = scmp.ge.s32.totalorder %s2314_s12, 5  ;;  %s42_s16 = sor.u32 %s41_s13, %s40_s14 }
  0x10   : > { %p43_p6 = scmp.eq.s32.totalorder %s42_s16, 0  ;;  %p1423_p7 = scmp.ge.s32.totalorder %s1859_s9, 20 }
  0x11   : > { %s2316_s12 = smov (%p38_p5, %s2314_s12), 0 }
  0x12   : > { %2295 = sst [smem:[#allocation7_spill]] %s2316_s12  ;;  %247 = sbr.rel (%p1423_p7) target bundleno = 43 (0x2b), region = 32 }
  0x13   : > { %s1969_s17 = scalar_select %p43_p6, %s1831_s25, %s45_s15  }
  0x17   : > { %250 = sbr.rel (!%p54_p4) target bundleno = 43 (0x2b), region = 36  ;;  %s252_s18 = sand.u32 (%p54_p4), 1, %s1831_s25  }
  0x18   : > { %s1457_s19 = sshll.u32 (%p54_p4), %s1851_s30, 5  ;;  %s1424_s20 = sshll.u32 (%p54_p4), %s252_s18, 6 }
  0x19   : > { %s257_s21 = sadd.s32 (%p54_p4), %s1847_s29, %s1457_s19  ;;  %s2296_s0 = sld [smem:[#allocation8_spill]] (%p54_p4) }
  0x1a   : > { %s1427_s22 = sshll.u32 (%p54_p4), %s257_s21, 2  ;;  %s254_s14 = scalar_lea.vmem (%p54_p4), [#allocation5], %s1424_s20 }
  0x1f   : > { %s1978_s13 = scalar_lea.vmem %s2296_s0, %s1427_s22 }
  0x20   : > { %v276_v0 = vld [vmem:[%s1978_s13] sm:$0xf]  ;;  %v278_v1 = vld [vmem:[%s1978_s13 + $0x8] sm:$0xf]  ;;  %v280_v2 = vld [vmem:[%s1978_s13 + $0x10] sm:$0xf] }
  0x21   : > { %277 = vst [vmem:[%s254_s14] sm:$0xf] %v276_v0  ;;  %279 = vst [vmem:[%s254_s14 + $0x4] sm:$0xf] %v278_v1  ;;  %v282_v3 = vld [vmem:[%s1978_s13 + $0x18] sm:$0xf] }
  0x22   : > { %281 = vst [vmem:[%s254_s14 + $0x8] sm:$0xf] %v280_v2  ;;  %v284_v4 = vld [vmem:[%s1978_s13 + $0x20] sm:$0xf]  ;;  %v286_v5 = vld [vmem:[%s1978_s13 + $0x28] sm:$0xf] }
  0x23   : > { %283 = vst [vmem:[%s254_s14 + $0xc] sm:$0xf] %v282_v3  ;;  %285 = vst [vmem:[%s254_s14 + $0x10] sm:$0xf] %v284_v4  ;;  %v288_v6 = vld [vmem:[%s1978_s13 + $0x30] sm:$0xf] }
  0x24   : > { %287 = vst [vmem:[%s254_s14 + $0x14] sm:$0xf] %v286_v5  ;;  %v290_v7 = vld [vmem:[%s1978_s13 + $0x38] sm:$0xf]  ;;  %v292_v8 = vld [vmem:[%s1978_s13 + $0x40] sm:$0xf] }
  0x25   : > { %289 = vst [vmem:[%s254_s14 + $0x18] sm:$0xf] %v288_v6  ;;  %291 = vst [vmem:[%s254_s14 + $0x1c] sm:$0xf] %v290_v7  ;;  %v294_v9 = vld [vmem:[%s1978_s13 + $0x48] sm:$0xf] }
  0x26   : > { %293 = vst [vmem:[%s254_s14 + $0x20] sm:$0xf] %v292_v8  ;;  %v296_v10 = vld [vmem:[%s1978_s13 + $0x50] sm:$0xf]  ;;  %v298_v11 = vld [vmem:[%s1978_s13 + $0x58] sm:$0xf] }
  0x27   : > { %295 = vst [vmem:[%s254_s14 + $0x24] sm:$0xf] %v294_v9  ;;  %297 = vst [vmem:[%s254_s14 + $0x28] sm:$0xf] %v296_v10  ;;  %v300_v12 = vld [vmem:[%s1978_s13 + $0x60] sm:$0xf] }
  0x28   : > { %299 = vst [vmem:[%s254_s14 + $0x2c] sm:$0xf] %v298_v11  ;;  %v302_v13 = vld [vmem:[%s1978_s13 + $0x68] sm:$0xf]  ;;  %v304_v14 = vld [vmem:[%s1978_s13 + $0x70] sm:$0xf] }
  0x29   : > { %301 = vst [vmem:[%s254_s14 + $0x30] sm:$0xf] %v300_v12  ;;  %303 = vst [vmem:[%s254_s14 + $0x34] sm:$0xf] %v302_v13  ;;  %v306_v15 = vld [vmem:[%s1978_s13 + $0x78] sm:$0xf] }
  0x2a   : > { %305 = vst [vmem:[%s254_s14 + $0x38] sm:$0xf] %v304_v14  ;;  %307 = vst [vmem:[%s254_s14 + $0x3c] sm:$0xf] %v306_v15 }
  0x2b PF: > { %p1428_p8 = scmp.ge.s32.totalorder %s1859_s9, 1  ;;  %p376_p9 = scmp.lt.s32.totalorder %s1859_s9, 21 }
  0x2d   : > { %p377_p10 = pnand %p1428_p8, %p376_p9 }
  0x2e   : > { %s383_s11 = sand.u32 (!%p377_p10), 1, %s1827_s24   ;;  %p418_p11 = scmp.lt.s32.totalorder (!%p377_p10), %s1843_s28, 4 }
  0x2f   : > { %380 = sbr.rel (%p377_p10) target bundleno = 1052 (0x41c), region = 85  ;;  %s1429_s15 = sshll.u32 (!%p377_p10), %s383_s11, 6 }
  0x30   : > { %p427_p12 = scmp.eq.s32.totalorder (!%p377_p10), %s1839_s27, 0  ;;  %p428_p13 = scmp.eq.s32.totalorder (!%p377_p10), %s1835_s26, 0 }
  0x31   : > { %s2015_s24 = scalar_lea.vmem (!%p377_p10), [#allocation5], %s1429_s15 }
  0x32   : > { %p429_p0 = pnand (!%p377_p10), %p428_p13, %p427_p12 }
  0x34   : > { %s2003_s16 = scalar_select %p418_p11, %s1843_s28, 4 }
  0x35   : > { %432 = sbr.rel (%p429_p0) target bundleno = 337 (0x151), region = 93  ;;  %p1432_p1 = scmp.ne.s32.totalorder (!%p429_p0), %s1843_s28, 0 }
  0x36   : > { %s1458_s18 = sshll.u32 %s2003_s16, 6  ;;  %s425_s21 = scalar_lea.vmem %s2286_s2, %s2003_s16 }
  0x37   : > { %s2013_s13 = scalar_lea.vmem %s2285_s1, %s1458_s18 }
  0x3a   : > { %436 = sbr.rel (%p1432_p1) target bundleno = 80 (0x50), region = 97 }
  0x3f   : > { %v437_v16 = vld [vmem:[%s2287_s3] sm:$0xff]  ;;  %v438_v17 = vld [vmem:[%s2287_s3 + $0x8] sm:$0xff]  ;;  %v439_v18 = vld [vmem:[%s2287_s3 + $0x10] sm:$0xff] }
  0x40   : > { %469 = vst [vmem:[#allocation2] sm:$0xff] %v437_v16  ;;  %470 = vst [vmem:[#allocation2 + $0x8] sm:$0xff] %v438_v17  ;;  %v440_v19 = vld [vmem:[%s2287_s3 + $0x18] sm:$0xff]  ;;  %v441_v20 = vld [vmem:[%s2287_s3 + $0x20] sm:$0xff] }
  0x41   : > { %471 = vst [vmem:[#allocation2 + $0x10] sm:$0xff] %v439_v18  ;;  %v442_v21 = vld [vmem:[%s2287_s3 + $0x28] sm:$0xff]  ;;  %472 = vst [vmem:[#allocation2 + $0x18] sm:$0xff] %v440_v19  ;;  %v443_v22 = vld [vmem:[%s2287_s3 + $0x30] sm:$0xff] }
  0x42   : > { %473 = vst [vmem:[#allocation2 + $0x20] sm:$0xff] %v441_v20  ;;  %474 = vst [vmem:[#allocation2 + $0x28] sm:$0xff] %v442_v21  ;;  %v444_v23 = vld [vmem:[%s2287_s3 + $0x38] sm:$0xff]  ;;  %v445_v24 = vld [vmem:[%s2287_s3 + $0x40] sm:$0xff] }
  0x43   : > { %475 = vst [vmem:[#allocation2 + $0x30] sm:$0xff] %v443_v22  ;;  %476 = vst [vmem:[#allocation2 + $0x38] sm:$0xff] %v444_v23  ;;  %v446_v25 = vld [vmem:[%s2287_s3 + $0x48] sm:$0xff]  ;;  %v447_v26 = vld [vmem:[%s2287_s3 + $0x50] sm:$0xff] }
  0x44   : > { %477 = vst [vmem:[#allocation2 + $0x40] sm:$0xff] %v445_v24  ;;  %v448_v27 = vld [vmem:[%s2287_s3 + $0x58] sm:$0xff]  ;;  %478 = vst [vmem:[#allocation2 + $0x48] sm:$0xff] %v446_v25  ;;  %v449_v28 = vld [vmem:[%s2287_s3 + $0x60] sm:$0xff] }
  0x45   : > { %479 = vst [vmem:[#allocation2 + $0x50] sm:$0xff] %v447_v26  ;;  %480 = vst [vmem:[#allocation2 + $0x58] sm:$0xff] %v448_v27  ;;  %v450_v29 = vld [vmem:[%s2287_s3 + $0x68] sm:$0xff]  ;;  %v451_v30 = vld [vmem:[%s2287_s3 + $0x70] sm:$0xff] }
  0x46   : > { %481 = vst [vmem:[#allocation2 + $0x60] sm:$0xff] %v449_v28  ;;  %482 = vst [vmem:[#allocation2 + $0x68] sm:$0xff] %v450_v29  ;;  %v452_v31 = vld [vmem:[%s2287_s3 + $0x78] sm:$0xff]  ;;  %v453_v32 = vld [vmem:[%s2287_s3 + $0x80] sm:$0xff] }
  0x47   : > { %483 = vst [vmem:[#allocation2 + $0x70] sm:$0xff] %v451_v30  ;;  %v454_v33 = vld [vmem:[%s2287_s3 + $0x88] sm:$0xff]  ;;  %484 = vst [vmem:[#allocation2 + $0x78] sm:$0xff] %v452_v31  ;;  %v455_v34 = vld [vmem:[%s2287_s3 + $0x90] sm:$0xff] }
  0x48   : > { %485 = vst [vmem:[#allocation2 + $0x80] sm:$0xff] %v453_v32  ;;  %486 = vst [vmem:[#allocation2 + $0x88] sm:$0xff] %v454_v33  ;;  %v456_v35 = vld [vmem:[%s2287_s3 + $0x98] sm:$0xff]  ;;  %v457_v36 = vld [vmem:[%s2287_s3 + $0xa0] sm:$0xff] }
  0x49   : > { %487 = vst [vmem:[#allocation2 + $0x90] sm:$0xff] %v455_v34  ;;  %488 = vst [vmem:[#allocation2 + $0x98] sm:$0xff] %v456_v35  ;;  %v458_v37 = vld [vmem:[%s2287_s3 + $0xa8] sm:$0xff]  ;;  %v459_v38 = vld [vmem:[%s2287_s3 + $0xb0] sm:$0xff] }
  0x4a   : > { %489 = vst [vmem:[#allocation2 + $0xa0] sm:$0xff] %v457_v36  ;;  %v460_v39 = vld [vmem:[%s2287_s3 + $0xb8] sm:$0xff]  ;;  %490 = vst [vmem:[#allocation2 + $0xa8] sm:$0xff] %v458_v37  ;;  %v461_v40 = vld [vmem:[%s2287_s3 + $0xc0] sm:$0xff] }
  0x4b   : > { %491 = vst [vmem:[#allocation2 + $0xb0] sm:$0xff] %v459_v38  ;;  %492 = vst [vmem:[#allocation2 + $0xb8] sm:$0xff] %v460_v39  ;;  %v462_v41 = vld [vmem:[%s2287_s3 + $0xc8] sm:$0xff]  ;;  %v463_v42 = vld [vmem:[%s2287_s3 + $0xd0] sm:$0xff] }
  0x4c   : > { %493 = vst [vmem:[#allocation2 + $0xc0] sm:$0xff] %v461_v40  ;;  %494 = vst [vmem:[#allocation2 + $0xc8] sm:$0xff] %v462_v41  ;;  %v464_v43 = vld [vmem:[%s2287_s3 + $0xd8] sm:$0xff]  ;;  %v465_v44 = vld [vmem:[%s2287_s3 + $0xe0] sm:$0xff] }
  0x4d   : > { %495 = vst [vmem:[#allocation2 + $0xd0] sm:$0xff] %v463_v42  ;;  %v466_v45 = vld [vmem:[%s2287_s3 + $0xe8] sm:$0xff]  ;;  %496 = vst [vmem:[#allocation2 + $0xd8] sm:$0xff] %v464_v43  ;;  %v467_v46 = vld [vmem:[%s2287_s3 + $0xf0] sm:$0xff] }
  0x4e   : > { %497 = vst [vmem:[#allocation2 + $0xe0] sm:$0xff] %v465_v44  ;;  %498 = vst [vmem:[#allocation2 + $0xe8] sm:$0xff] %v466_v45  ;;  %v468_v47 = vld [vmem:[%s2287_s3 + $0xf8] sm:$0xff] }
  0x4f   : > { %499 = vst [vmem:[#allocation2 + $0xf0] sm:$0xff] %v467_v46  ;;  %500 = vst [vmem:[#allocation2 + $0xf8] sm:$0xff] %v468_v47 }
  0x50 PF: > { %v1773_v48 = vld [vmem:[%s2013_s13 + $0x38] sm:$0xff]   ;;  %v1774_v49 = vld [vmem:[%s2013_s13 + $0x30] sm:$0xff]   ;;  %v1775_v50 = vld [vmem:[%s2013_s13 + $0x28] sm:$0xff]  }
  0x51   : > { %1551 = vmatprep.subr.bf16.mxu0 %v1773_v48  ;;  %1666 = vmatprep.subr.bf16.mxu1 %v1773_v48  ;;  %v1776_v51 = vld [vmem:[%s2013_s13 + $0x20] sm:$0xff]   ;;  %v502_v53 = vld [vmem:[#allocation2 + $0x8] sm:$0xff]  ;;  %v1777_v58 = vld [vmem:[%s2013_s13 + $0x18] sm:$0xff]  }
  0x52   : > { %1552 = vmatpush3.bf16.msra.mxu0 %v1773_v48  ;;  %1674 = vmatpush3.bf16.msra.mxu1 %v1773_v48  ;;  %v501_v52 = vld [vmem:[#allocation2] sm:$0xff]  ;;  %v518_v56 = vld [vmem:[#allocation2 + $0x88] sm:$0xff]  ;;  %v1778_v59 = vld [vmem:[%s2013_s13 + $0x10] sm:$0xff]  }
  0x53   : > { %1553 = vmatprep.subr.bf16.mxu0 %v1774_v49  ;;  %1667 = vmatprep.subr.bf16.mxu1 %v1774_v49  ;;  %v517_v54 = vld [vmem:[#allocation2 + $0x80] sm:$0xff]  ;;  %v533_v55 = vpack.c.bf16 %v502_v53, %v501_v52  ;;  %v1779_v60 = vld [vmem:[%s2013_s13 + $0x8] sm:$0xff]   ;;  %v503_v62 = vld [vmem:[#allocation2 + $0x10] sm:$0xff] }
  0x54   : > { %v541_v57 = vpack.c.bf16 %v518_v56, %v517_v54  ;;  %v1780_v61 = vld [vmem:[%s2013_s13] sm:$0xff]   ;;  %v504_v63 = vld [vmem:[#allocation2 + $0x18] sm:$0xff]  ;;  %v519_v0 = vld [vmem:[#allocation2 + $0x90] sm:$0xff] }
  0x55   : > { %1567 = vmatprep.mubr.bf16.mxu0 %v533_v55  ;;  %v520_v1 = vld [vmem:[#allocation2 + $0x98] sm:$0xff]  ;;  %v505_v2 = vld [vmem:[#allocation2 + $0x20] sm:$0xff]  ;;  %v506_v3 = vld [vmem:[#allocation2 + $0x28] sm:$0xff]  ;;  %v534_v6 = vpack.c.bf16 %v504_v63, %v503_v62 }
  0x56   : > { %1554 = vmatpush3.bf16.msra.mxu0 %v1774_v49  ;;  %1675 = vmatpush3.bf16.msra.mxu1 %v1774_v49  ;;  %v521_v4 = vld [vmem:[#allocation2 + $0xa0] sm:$0xff]  ;;  %v522_v5 = vld [vmem:[#allocation2 + $0xa8] sm:$0xff]  ;;  %v542_v7 = vpack.c.bf16 %v520_v1, %v519_v0  ;;  %v535_v8 = vpack.c.bf16 %v506_v3, %v505_v2  ;;  %v507_v10 = vld [vmem:[#allocation2 + $0x30] sm:$0xff] }
  0x57   : > { %1555 = vmatprep.subr.bf16.mxu0 %v1775_v50  ;;  %1668 = vmatprep.subr.bf16.mxu1 %v1775_v50  ;;  %v543_v9 = vpack.c.bf16 %v522_v5, %v521_v4  ;;  %v508_v11 = vld [vmem:[#allocation2 + $0x38] sm:$0xff]  ;;  %v523_v12 = vld [vmem:[#allocation2 + $0xb0] sm:$0xff]  ;;  %v509_v14 = vld [vmem:[#allocation2 + $0x40] sm:$0xff] }
  0x58   : > { %1583 = vmatprep.mubr.bf16.mxu1 %v541_v57  ;;  %v524_v13 = vld [vmem:[#allocation2 + $0xb8] sm:$0xff]  ;;  %v510_v15 = vld [vmem:[#allocation2 + $0x48] sm:$0xff]  ;;  %v525_v16 = vld [vmem:[#allocation2 + $0xc0] sm:$0xff]  ;;  %v536_v18 = vpack.c.bf16 %v508_v11, %v507_v10 }
  0x59   : > { %v526_v17 = vld [vmem:[#allocation2 + $0xc8] sm:$0xff]  ;;  %v544_v19 = vpack.c.bf16 %v524_v13, %v523_v12  ;;  %v537_v20 = vpack.c.bf16 %v510_v15, %v509_v14  ;;  %v511_v22 = vld [vmem:[#allocation2 + $0x50] sm:$0xff]  ;;  %v512_v23 = vld [vmem:[#allocation2 + $0x58] sm:$0xff] }
  0x5a   : > { %1556 = vmatpush3.bf16.msra.mxu0 %v1775_v50  ;;  %1676 = vmatpush3.bf16.msra.mxu1 %v1775_v50  ;;  %v545_v21 = vpack.c.bf16 %v526_v17, %v525_v16  ;;  %v527_v24 = vld [vmem:[#allocation2 + $0xd0] sm:$0xff]  ;;  %v528_v25 = vld [vmem:[#allocation2 + $0xd8] sm:$0xff]  ;;  %v513_v26 = vld [vmem:[#allocation2 + $0x60] sm:$0xff]  ;;  %v538_v30 = vpack.c.bf16 %v512_v23, %v511_v22 }
  0x5b   : > { %1557 = vmatprep.subr.bf16.mxu0 %v1776_v51  ;;  %1669 = vmatprep.subr.bf16.mxu1 %v1776_v51  ;;  %v514_v27 = vld [vmem:[#allocation2 + $0x68] sm:$0xff]  ;;  %v529_v28 = vld [vmem:[#allocation2 + $0xe0] sm:$0xff]  ;;  %v546_v31 = vpack.c.bf16 %v528_v25, %v527_v24  ;;  %v515_v34 = vld [vmem:[#allocation2 + $0x70] sm:$0xff] }
  0x5c   : > { %v530_v29 = vld [vmem:[#allocation2 + $0xe8] sm:$0xff]  ;;  %v539_v32 = vpack.c.bf16 %v514_v27, %v513_v26  ;;  %v516_v35 = vld [vmem:[#allocation2 + $0x78] sm:$0xff]  ;;  %v531_v36 = vld [vmem:[#allocation2 + $0xf0] sm:$0xff] }
  0x5d   : > { %v547_v33 = vpack.c.bf16 %v530_v29, %v529_v28  ;;  %v532_v37 = vld [vmem:[#allocation2 + $0xf8] sm:$0xff]  ;;  %v540_v38 = vpack.c.bf16 %v516_v35, %v515_v34 }
  0x5e   : > { %1558 = vmatpush3.bf16.msra.mxu0 %v1776_v51  ;;  %1677 = vmatpush3.bf16.msra.mxu1 %v1776_v51  ;;  %v548_v39 = vpack.c.bf16 %v532_v37, %v531_v36 }
  0x5f   : > { %1559 = vmatprep.subr.bf16.mxu0 %v1777_v58  ;;  %1670 = vmatprep.subr.bf16.mxu1 %v1777_v58 }
  0x62   : > { %1560 = vmatpush3.bf16.msra.mxu0 %v1777_v58  ;;  %1678 = vmatpush3.bf16.msra.mxu1 %v1777_v58 }
  0x63   : > { %1561 = vmatprep.subr.bf16.mxu0 %v1778_v59  ;;  %1671 = vmatprep.subr.bf16.mxu1 %v1778_v59 }
  0x66   : > { %1562 = vmatpush3.bf16.msra.mxu0 %v1778_v59  ;;  %1679 = vmatpush3.bf16.msra.mxu1 %v1778_v59 }
  0x67   : > { %1563 = vmatprep.subr.bf16.mxu0 %v1779_v60  ;;  %1672 = vmatprep.subr.bf16.mxu1 %v1779_v60 }
  0x6a   : > { %1564 = vmatpush3.bf16.msra.mxu0 %v1779_v60  ;;  %1680 = vmatpush3.bf16.msra.mxu1 %v1779_v60 }
  0x6b   : > { %1565 = vmatprep.subr.bf16.mxu0 %v1780_v61  ;;  %1673 = vmatprep.subr.bf16.mxu1 %v1780_v61 }
  0x6e   : > { %1566 = vmatpush3.bf16.msra.mxu0 %v1780_v61  ;;  %1681 = vmatpush3.bf16.msra.mxu1 %v1780_v61 }
  0x71   : > { %1568 = vmatmul.mubr.bf16.vlgmr.msra.gmra.mxu0 %v534_v6  ;;  %1584 = vmatmul.mubr.bf16.vlgmr.msra.gmra.mxu1 %v542_v7 }
  0x72   : > { %1571 = vmatprep.mubr.bf16.mxu0 %v535_v8  ;;  %1587 = vmatprep.mubr.bf16.mxu1 %v543_v9 }
  0x79   : > { %1572 = vmatmul.mubr.bf16.gmra.mxu0 %v536_v18  ;;  %1588 = vmatmul.mubr.bf16.gmra.mxu1 %v544_v19 }
  0x7a   : > { %1575 = vmatprep.mubr.bf16.mxu0 %v537_v20  ;;  %1591 = vmatprep.mubr.bf16.mxu1 %v545_v21 }
  0x81   : > { %1576 = vmatmul.mubr.bf16.gmra.mxu0 %v538_v30  ;;  %1592 = vmatmul.mubr.bf16.gmra.mxu1 %v546_v31 }
  0x82   : > { %1579 = vmatprep.mubr.bf16.mxu0 %v539_v32  ;;  %1595 = vmatprep.mubr.bf16.mxu1 %v547_v33 }
  0x89   : > { %1580 = vmatmul.mubr.bf16.gmra.mxu0 %v540_v38  ;;  %1596 = vmatmul.mubr.bf16.gmra.mxu1 %v548_v39 }
 0x131   : > { %v1569_v40 = vpop.f32.mrf.mxu0  ;;  %v1585_v41 = vpop.f32.mrf.mxu1 }
 0x132   : > { %776 = vst [vmem:[#allocation3 + $0x10] sm:$0xff] %v1569_v40  ;;  %792 = vst [vmem:[#allocation3 + $0x90] sm:$0xff] %v1585_v41 }
 0x133   : > { %v647_v42 = vpop.f32.mrf.mxu0  ;;  %v711_v43 = vpop.f32.mrf.mxu1 }
 0x134   : > { %774 = vst [vmem:[#allocation3] sm:$0xff] %v647_v42  ;;  %790 = vst [vmem:[#allocation3 + $0x80] sm:$0xff] %v711_v43 }
 0x135   : > { %v1570_v44 = vpop.f32.mrf.mxu0  ;;  %v1586_v45 = vpop.f32.mrf.mxu1 }
 0x136   : > { %777 = vst [vmem:[#allocation3 + $0x18] sm:$0xff] %v1570_v44  ;;  %793 = vst [vmem:[#allocation3 + $0x98] sm:$0xff] %v1586_v45 }
 0x137   : > { %v650_v46 = vpop.f32.mrf.mxu0  ;;  %v714_v47 = vpop.f32.mrf.mxu1 }
 0x138   : > { %775 = vst [vmem:[#allocation3 + $0x8] sm:$0xff] %v650_v46  ;;  %791 = vst [vmem:[#allocation3 + $0x88] sm:$0xff] %v714_v47 }
 0x139   : > { %v1573_v48 = vpop.f32.mrf.mxu0  ;;  %v1589_v49 = vpop.f32.mrf.mxu1 }
 0x13a   : > { %780 = vst [vmem:[#allocation3 + $0x30] sm:$0xff] %v1573_v48  ;;  %796 = vst [vmem:[#allocation3 + $0xb0] sm:$0xff] %v1589_v49 }
 0x13b   : > { %v663_v50 = vpop.f32.mrf.mxu0  ;;  %v727_v51 = vpop.f32.mrf.mxu1 }
 0x13c   : > { %778 = vst [vmem:[#allocation3 + $0x20] sm:$0xff] %v663_v50  ;;  %794 = vst [vmem:[#allocation3 + $0xa0] sm:$0xff] %v727_v51 }
 0x13d   : > { %v1574_v52 = vpop.f32.mrf.mxu0  ;;  %v1590_v53 = vpop.f32.mrf.mxu1 }
 0x13e   : > { %781 = vst [vmem:[#allocation3 + $0x38] sm:$0xff] %v1574_v52  ;;  %797 = vst [vmem:[#allocation3 + $0xb8] sm:$0xff] %v1590_v53 }
 0x13f   : > { %v666_v54 = vpop.f32.mrf.mxu0  ;;  %v730_v55 = vpop.f32.mrf.mxu1 }
 0x140   : > { %779 = vst [vmem:[#allocation3 + $0x28] sm:$0xff] %v666_v54  ;;  %795 = vst [vmem:[#allocation3 + $0xa8] sm:$0xff] %v730_v55 }
 0x141   : > { %v1577_v56 = vpop.f32.mrf.mxu0  ;;  %v1593_v57 = vpop.f32.mrf.mxu1 }
 0x142   : > { %784 = vst [vmem:[#allocation3 + $0x50] sm:$0xff] %v1577_v56  ;;  %800 = vst [vmem:[#allocation3 + $0xd0] sm:$0xff] %v1593_v57 }
 0x143   : > { %v679_v58 = vpop.f32.mrf.mxu0  ;;  %v743_v59 = vpop.f32.mrf.mxu1 }
 0x144   : > { %782 = vst [vmem:[#allocation3 + $0x40] sm:$0xff] %v679_v58  ;;  %798 = vst [vmem:[#allocation3 + $0xc0] sm:$0xff] %v743_v59 }
 0x145   : > { %v1578_v60 = vpop.f32.mrf.mxu0  ;;  %v1594_v61 = vpop.f32.mrf.mxu1 }
 0x146   : > { %785 = vst [vmem:[#allocation3 + $0x58] sm:$0xff] %v1578_v60  ;;  %801 = vst [vmem:[#allocation3 + $0xd8] sm:$0xff] %v1594_v61 }
 0x147   : > { %v682_v62 = vpop.f32.mrf.mxu0  ;;  %v746_v63 = vpop.f32.mrf.mxu1 }
 0x148   : > { %783 = vst [vmem:[#allocation3 + $0x48] sm:$0xff] %v682_v62  ;;  %799 = vst [vmem:[#allocation3 + $0xc8] sm:$0xff] %v746_v63 }
 0x149   : > { %v1581_v0 = vpop.f32.mrf.mxu0  ;;  %v1597_v1 = vpop.f32.mrf.mxu1 }
 0x14a   : > { %788 = vst [vmem:[#allocation3 + $0x70] sm:$0xff] %v1581_v0  ;;  %804 = vst [vmem:[#allocation3 + $0xf0] sm:$0xff] %v1597_v1 }
 0x14b   : > { %v695_v2 = vpop.f32.mrf.mxu0  ;;  %v759_v3 = vpop.f32.mrf.mxu1 }
 0x14c   : > { %786 = vst [vmem:[#allocation3 + $0x60] sm:$0xff] %v695_v2  ;;  %802 = vst [vmem:[#allocation3 + $0xe0] sm:$0xff] %v759_v3 }
 0x14d   : > { %v1582_v4 = vpop.f32.mrf.mxu0  ;;  %v1598_v5 = vpop.f32.mrf.mxu1 }
 0x14e   : > { %789 = vst [vmem:[#allocation3 + $0x78] sm:$0xff] %v1582_v4  ;;  %805 = vst [vmem:[#allocation3 + $0xf8] sm:$0xff] %v1598_v5 }
 0x14f   : > { %v698_v6 = vpop.f32.mrf.mxu0  ;;  %v762_v7 = vpop.f32.mrf.mxu1 }
 0x150   : > { %787 = vst [vmem:[#allocation3 + $0x68] sm:$0xff] %v698_v6  ;;  %803 = vst [vmem:[#allocation3 + $0xe8] sm:$0xff] %v762_v7 }
 0x151 PF: > { %p1441_p2 = scmp.ne.s32.totalorder %s1835_s26, 0 }
 0x153   : > { %808 = sbr.rel (%p1441_p2) target bundleno = 353 (0x161), region = 101 }
 0x158   : > { %v1861_v8 = vmov 0.0  }
 0x159   : > { %809 = vst [vmem:[#allocation4 + $0x30] sm:$0xff] %v1861_v8  ;;  %810 = vst [vmem:[#allocation4] sm:$0xff] %v1861_v8 }
 0x15a   : > { %811 = vst [vmem:[#allocation4 + $0x58] sm:$0xff] %v1861_v8  ;;  %812 = vst [vmem:[#allocation4 + $0x18] sm:$0xff] %v1861_v8 }
 0x15b   : > { %813 = vst [vmem:[#allocation4 + $0x50] sm:$0xff] %v1861_v8  ;;  %814 = vst [vmem:[#allocation4 + $0x68] sm:$0xff] %v1861_v8 }
 0x15c   : > { %815 = vst [vmem:[#allocation4 + $0x8] sm:$0xff] %v1861_v8  ;;  %816 = vst [vmem:[#allocation4 + $0x48] sm:$0xff] %v1861_v8 }
 0x15d   : > { %817 = vst [vmem:[#allocation4 + $0x40] sm:$0xff] %v1861_v8  ;;  %818 = vst [vmem:[#allocation4 + $0x20] sm:$0xff] %v1861_v8 }
 0x15e   : > { %819 = vst [vmem:[#allocation4 + $0x10] sm:$0xff] %v1861_v8  ;;  %820 = vst [vmem:[#allocation4 + $0x38] sm:$0xff] %v1861_v8 }
 0x15f   : > { %821 = vst [vmem:[#allocation4 + $0x60] sm:$0xff] %v1861_v8  ;;  %822 = vst [vmem:[#allocation4 + $0x70] sm:$0xff] %v1861_v8 }
 0x160   : > { %823 = vst [vmem:[#allocation4 + $0x78] sm:$0xff] %v1861_v8  ;;  %824 = vst [vmem:[#allocation4 + $0x28] sm:$0xff] %v1861_v8 }
 0x161 PF: > { %s1442_s13 = sshll.u32 %s1835_s26, 7  ;;  %v1781_v9 = vld [vmem:[%s2015_s24] sm:$0xff]   ;;  %v1783_v35 = vld [vmem:[%s2015_s24 + $0x8] sm:$0xff]   ;;  %v1785_v37 = vld [vmem:[%s2015_s24 + $0x10] sm:$0xff]   ;;  %p1060_p3 = scmp.eq.s32.totalorder %s1835_s26, 1 }
 0x162   : > { %v1782_v10 = vld [vmem:[%s2015_s24 + $0x20] sm:$0xff]   ;;  %s2126_s19 = scalar_lea.vmem [#allocation3], %s1442_s13  ;;  %1615 = vmatprep.mubr.bf16.mxu0 %v1781_v9  ;;  %v1784_v36 = vld [vmem:[%s2015_s24 + $0x28] sm:$0xff]   ;;  %v1786_v38 = vld [vmem:[%s2015_s24 + $0x30] sm:$0xff]   ;;  %p1451_p4 = scmp.ne.s32.totalorder %s1835_s26, 1 }
 0x163   : > { %v873_v11 = vld [vmem:[%s2126_s19 + $0x70] sm:$0xff]  ;;  %v874_v12 = vld [vmem:[%s2126_s19 + $0x78] sm:$0xff]  ;;  %v871_v13 = vld [vmem:[%s2126_s19 + $0x60] sm:$0xff]  ;;  %1623 = vmatprep.mubr.bf16.mxu1 %v1782_v10 }
 0x164   : > { %v882_v14 = vpack.c.bf16 %v874_v12, %v873_v11  ;;  %v872_v15 = vld [vmem:[%s2126_s19 + $0x68] sm:$0xff]  ;;  %v869_v17 = vld [vmem:[%s2126_s19 + $0x50] sm:$0xff]  ;;  %v870_v18 = vld [vmem:[%s2126_s19 + $0x58] sm:$0xff] }
 0x165   : > { %v881_v16 = vpack.c.bf16 %v872_v15, %v871_v13  ;;  %v880_v19 = vpack.c.bf16 %v870_v18, %v869_v17  ;;  %v867_v20 = vld [vmem:[%s2126_s19 + $0x40] sm:$0xff]  ;;  %v868_v21 = vld [vmem:[%s2126_s19 + $0x48] sm:$0xff]  ;;  %v865_v23 = vld [vmem:[%s2126_s19 + $0x30] sm:$0xff] }
 0x166   : > { %1599 = vmatprep.subr.bf16.mxu0 %v882_v14  ;;  %1682 = vmatprep.subr.bf16.mxu1 %v882_v14  ;;  %v879_v22 = vpack.c.bf16 %v868_v21, %v867_v20  ;;  %v866_v24 = vld [vmem:[%s2126_s19 + $0x38] sm:$0xff]  ;;  %v863_v26 = vld [vmem:[%s2126_s19 + $0x20] sm:$0xff]  ;;  %v864_v27 = vld [vmem:[%s2126_s19 + $0x28] sm:$0xff] }
 0x167   : > { %1600 = vmatpush3.bf16.msra.mxu0 %v882_v14  ;;  %1690 = vmatpush3.bf16.msra.mxu1 %v882_v14  ;;  %v878_v25 = vpack.c.bf16 %v866_v24, %v865_v23  ;;  %v877_v28 = vpack.c.bf16 %v864_v27, %v863_v26  ;;  %v861_v29 = vld [vmem:[%s2126_s19 + $0x10] sm:$0xff]  ;;  %v862_v30 = vld [vmem:[%s2126_s19 + $0x18] sm:$0xff]  ;;  %v859_v32 = vld [vmem:[%s2126_s19] sm:$0xff] }
 0x168   : > { %1601 = vmatprep.subr.bf16.mxu0 %v881_v16  ;;  %1683 = vmatprep.subr.bf16.mxu1 %v881_v16  ;;  %v876_v31 = vpack.c.bf16 %v862_v30, %v861_v29  ;;  %v860_v33 = vld [vmem:[%s2126_s19 + $0x8] sm:$0xff]  ;;  %v1787_v39 = vld [vmem:[%s2015_s24 + $0x18] sm:$0xff]   ;;  %v836_v42 = vld [vmem:[#allocation4 + $0x10] sm:$0xff] }
 0x169   : > { %v875_v34 = vpack.c.bf16 %v860_v33, %v859_v32  ;;  %v1788_v40 = vld [vmem:[%s2015_s24 + $0x38] sm:$0xff]   ;;  %v826_v45 = vld [vmem:[#allocation4 + $0x30] sm:$0xff]  ;;  %v834_v46 = vld [vmem:[#allocation4 + $0x40] sm:$0xff]  ;;  %s1452_s24 = sshll.u32 (!%p1451_p4), %s1839_s27, 7 }
 0x16a   : > { %v828_v41 = vld [vmem:[#allocation4 + $0x58] sm:$0xff]  ;;  %v827_v57 = vld [vmem:[#allocation4] sm:$0xff]  ;;  %v832_v63 = vld [vmem:[#allocation4 + $0x8] sm:$0xff]  ;;  %s2158_s16 = scalar_lea.vmem (!%p1451_p4), [#allocation2], %s1452_s24 }
 0x16b   : > { %1602 = vmatpush3.bf16.msra.mxu0 %v881_v16  ;;  %1691 = vmatpush3.bf16.msra.mxu1 %v881_v16  ;;  %v829_v51 = vld [vmem:[#allocation4 + $0x18] sm:$0xff]  ;;  %v835_v58 = vld [vmem:[#allocation4 + $0x20] sm:$0xff]  ;;  %v830_v5 = vld [vmem:[#allocation4 + $0x50] sm:$0xff] }
 0x16c   : > { %1603 = vmatprep.subr.bf16.mxu0 %v880_v19  ;;  %1684 = vmatprep.subr.bf16.mxu1 %v880_v19  ;;  %v837_v52 = vld [vmem:[#allocation4 + $0x38] sm:$0xff]  ;;  %v838_v6 = vld [vmem:[#allocation4 + $0x60] sm:$0xff]  ;;  %v833_v11 = vld [vmem:[#allocation4 + $0x48] sm:$0xff] }
 0x16d   : > { %v840_v0 = vld [vmem:[#allocation4 + $0x78] sm:$0xff]  ;;  %v841_v12 = vld [vmem:[#allocation4 + $0x28] sm:$0xff]  ;;  %v839_v18 = vld [vmem:[#allocation4 + $0x70] sm:$0xff] }
 0x16e   : > { %v831_v17 = vld [vmem:[#allocation4 + $0x68] sm:$0xff] }
 0x16f   : > { %1604 = vmatpush3.bf16.msra.mxu0 %v880_v19  ;;  %1692 = vmatpush3.bf16.msra.mxu1 %v880_v19 }
 0x170   : > { %1605 = vmatprep.subr.bf16.mxu0 %v879_v22  ;;  %1685 = vmatprep.subr.bf16.mxu1 %v879_v22 }
 0x173   : > { %1606 = vmatpush3.bf16.msra.mxu0 %v879_v22  ;;  %1693 = vmatpush3.bf16.msra.mxu1 %v879_v22 }
 0x174   : > { %1607 = vmatprep.subr.bf16.mxu0 %v878_v25  ;;  %1686 = vmatprep.subr.bf16.mxu1 %v878_v25 }
 0x177   : > { %1608 = vmatpush3.bf16.msra.mxu0 %v878_v25  ;;  %1694 = vmatpush3.bf16.msra.mxu1 %v878_v25 }
 0x178   : > { %1609 = vmatprep.subr.bf16.mxu0 %v877_v28  ;;  %1687 = vmatprep.subr.bf16.mxu1 %v877_v28 }
 0x17b   : > { %1610 = vmatpush3.bf16.msra.mxu0 %v877_v28  ;;  %1695 = vmatpush3.bf16.msra.mxu1 %v877_v28 }
 0x17c   : > { %1611 = vmatprep.subr.bf16.mxu0 %v876_v31  ;;  %1688 = vmatprep.subr.bf16.mxu1 %v876_v31 }
 0x17f   : > { %1612 = vmatpush3.bf16.msra.mxu0 %v876_v31  ;;  %1696 = vmatpush3.bf16.msra.mxu1 %v876_v31 }
 0x180   : > { %1613 = vmatprep.subr.bf16.mxu0 %v875_v34  ;;  %1689 = vmatprep.subr.bf16.mxu1 %v875_v34 }
 0x183   : > { %1614 = vmatpush3.bf16.msra.mxu0 %v875_v34  ;;  %1697 = vmatpush3.bf16.msra.mxu1 %v875_v34 }
 0x186   : > { %1616 = vmatmul.mubr.bf16.vlgmr.msra.gmra.mxu0 %v1783_v35  ;;  %1624 = vmatmul.mubr.bf16.vlgmr.msra.gmra.mxu1 %v1784_v36 }
 0x187   : > { %1619 = vmatprep.mubr.bf16.mxu0 %v1785_v37  ;;  %1627 = vmatprep.mubr.bf16.mxu1 %v1786_v38 }
 0x18e   : > { %1620 = vmatmul.mubr.bf16.gmra.mxu0 %v1787_v39  ;;  %1628 = vmatmul.mubr.bf16.gmra.mxu1 %v1788_v40 }
 0x246   : > { %v1617_v43 = vpop.f32.mrf.mxu0  ;;  %v1625_v44 = vpop.f32.mrf.mxu1 }
 0x247   : > { %v1030_v47 = vadd.f32 %v1617_v43, %v828_v41  ;;  %v1038_v48 = vadd.f32 %v1625_v44, %v836_v42 }
 0x248   : > { %v965_v49 = vpop.f32.mrf.mxu0  ;;  %v997_v50 = vpop.f32.mrf.mxu1 }
 0x249   : > { %1046 = vst [vmem:[#allocation4 + $0x58] sm:$0xff] %v1030_v47  ;;  %1054 = vst [vmem:[#allocation4 + $0x10] sm:$0xff] %v1038_v48  ;;  %v1028_v53 = vadd.f32 %v965_v49, %v826_v45  ;;  %v1036_v54 = vadd.f32 %v997_v50, %v834_v46 }
 0x24a   : > { %v1618_v55 = vpop.f32.mrf.mxu0  ;;  %v1626_v56 = vpop.f32.mrf.mxu1 }
 0x24b   : > { %1044 = vst [vmem:[#allocation4 + $0x30] sm:$0xff] %v1028_v53  ;;  %1052 = vst [vmem:[#allocation4 + $0x40] sm:$0xff] %v1036_v54  ;;  %v1031_v59 = vadd.f32 %v1618_v55, %v829_v51  ;;  %v1039_v60 = vadd.f32 %v1626_v56, %v837_v52 }
 0x24c   : > { %v968_v61 = vpop.f32.mrf.mxu0  ;;  %v1000_v62 = vpop.f32.mrf.mxu1 }
 0x24d   : > { %1047 = vst [vmem:[#allocation4 + $0x18] sm:$0xff] %v1031_v59  ;;  %1055 = vst [vmem:[#allocation4 + $0x38] sm:$0xff] %v1039_v60  ;;  %v1029_v1 = vadd.f32 %v968_v61, %v827_v57  ;;  %v1037_v2 = vadd.f32 %v1000_v62, %v835_v58 }
 0x24e   : > { %v1621_v3 = vpop.f32.mrf.mxu0  ;;  %v1629_v4 = vpop.f32.mrf.mxu1 }
 0x24f   : > { %1045 = vst [vmem:[#allocation4] sm:$0xff] %v1029_v1  ;;  %1053 = vst [vmem:[#allocation4 + $0x20] sm:$0xff] %v1037_v2  ;;  %v1034_v7 = vadd.f32 %v1621_v3, %v832_v63  ;;  %v1042_v8 = vadd.f32 %v1629_v4, %v840_v0 }
 0x250   : > { %v981_v9 = vpop.f32.mrf.mxu0  ;;  %v1013_v10 = vpop.f32.mrf.mxu1 }
 0x251   : > { %1050 = vst [vmem:[#allocation4 + $0x8] sm:$0xff] %v1034_v7  ;;  %1058 = vst [vmem:[#allocation4 + $0x78] sm:$0xff] %v1042_v8  ;;  %v1032_v13 = vadd.f32 %v981_v9, %v830_v5  ;;  %v1040_v14 = vadd.f32 %v1013_v10, %v838_v6 }
 0x252   : > { %v1622_v15 = vpop.f32.mrf.mxu0  ;;  %v1630_v16 = vpop.f32.mrf.mxu1 }
 0x253   : > { %1048 = vst [vmem:[#allocation4 + $0x50] sm:$0xff] %v1032_v13  ;;  %1056 = vst [vmem:[#allocation4 + $0x60] sm:$0xff] %v1040_v14  ;;  %v1035_v19 = vadd.f32 %v1622_v15, %v833_v11  ;;  %v1043_v20 = vadd.f32 %v1630_v16, %v841_v12  ;;  %1063 = sbr.rel (%p1451_p4) target bundleno = 613 (0x265), region = 105 }
 0x254   : > { %v984_v21 = vpop.f32.mrf.mxu0  ;;  %v1016_v22 = vpop.f32.mrf.mxu1 }
 0x255   : > { %1051 = vst [vmem:[#allocation4 + $0x48] sm:$0xff] %v1035_v19  ;;  %1059 = vst [vmem:[#allocation4 + $0x28] sm:$0xff] %v1043_v20  ;;  %v1033_v23 = vadd.f32 %v984_v21, %v831_v17  ;;  %v1041_v24 = vadd.f32 %v1016_v22, %v839_v18 }
 0x257   : > { %1049 = vst [vmem:[#allocation4 + $0x68] sm:$0xff] %v1033_v23  ;;  %1057 = vst [vmem:[#allocation4 + $0x70] sm:$0xff] %v1041_v24 }
 0x258   : > { %v1065_v25 = vld [vmem:[#allocation4 + $0x30] sm:$0xff]  ;;  %v1453_v26 = vld [vmem:[%s425_s21] ss:$0 sm:$0xff]  ;;  %v1067_v30 = vld [vmem:[#allocation4 + $0x58] sm:$0xff] }
 0x259   : > { %v1066_v27 = vld [vmem:[#allocation4] sm:$0xff]  ;;  %v1088_v28 = vadd.f32 %v1453_v26, %v1065_v25  ;;  %v1068_v31 = vld [vmem:[#allocation4 + $0x18] sm:$0xff]  ;;  %v1090_v33 = vadd.f32 %v1453_v26, %v1067_v30  ;;  %v1071_v37 = vld [vmem:[#allocation4 + $0x8] sm:$0xff] }
 0x25a   : > { %v1089_v29 = vadd.f32 %v1453_v26, %v1066_v27  ;;  %v1069_v32 = vld [vmem:[#allocation4 + $0x50] sm:$0xff]  ;;  %v1091_v34 = vadd.f32 %v1453_v26, %v1068_v31  ;;  %v1094_v42 = vadd.f32 %v1453_v26, %v1071_v37  ;;  %v1073_v43 = vld [vmem:[#allocation4 + $0x40] sm:$0xff]  ;;  %v1076_v50 = vld [vmem:[#allocation4 + $0x38] sm:$0xff] }
 0x25b   : > { %v1092_v35 = vadd.f32 %v1453_v26, %v1069_v32  ;;  %v1104_v39 = vmax.f32 %v1088_v28, 0.0  ;;  %v1074_v44 = vld [vmem:[#allocation4 + $0x20] sm:$0xff]  ;;  %v1075_v45 = vld [vmem:[#allocation4 + $0x10] sm:$0xff]  ;;  %v1106_v46 = vmax.f32 %v1090_v33, 0.0  ;;  %v1096_v55 = vadd.f32 %v1453_v26, %v1073_v43  ;;  %v1079_v57 = vld [vmem:[#allocation4 + $0x78] sm:$0xff] }
 0x25c   : > { %v1072_v38 = vld [vmem:[#allocation4 + $0x48] sm:$0xff]  ;;  %v1105_v40 = vmax.f32 %v1089_v29, 0.0  ;;  %v1107_v47 = vmax.f32 %v1091_v34, 0.0  ;;  %v1077_v51 = vld [vmem:[#allocation4 + $0x60] sm:$0xff]  ;;  %v1110_v54 = vmax.f32 %v1094_v42, 0.0  ;;  %v1097_v56 = vadd.f32 %v1453_v26, %v1074_v44 }
 0x25d   : > { %v1108_v48 = vmax.f32 %v1092_v35, 0.0  ;;  %v1095_v49 = vadd.f32 %v1453_v26, %v1072_v38  ;;  %1121 = vst [vmem:[%s2158_s16] sm:$0xff] %v1104_v39  ;;  %v1080_v58 = vld [vmem:[#allocation4 + $0x28] sm:$0xff]  ;;  %1123 = vst [vmem:[%s2158_s16 + $0x10] sm:$0xff] %v1106_v46  ;;  %v1098_v60 = vadd.f32 %v1453_v26, %v1075_v45  ;;  %v1099_v61 = vadd.f32 %v1453_v26, %v1076_v50 }
 0x25e   : > { %v1070_v36 = vld [vmem:[#allocation4 + $0x68] sm:$0xff]  ;;  %v1078_v52 = vld [vmem:[#allocation4 + $0x70] sm:$0xff]  ;;  %1122 = vst [vmem:[%s2158_s16 + $0x8] sm:$0xff] %v1105_v40  ;;  %1124 = vst [vmem:[%s2158_s16 + $0x18] sm:$0xff] %v1107_v47  ;;  %v1100_v62 = vadd.f32 %v1453_v26, %v1077_v51  ;;  %v1112_v63 = vmax.f32 %v1096_v55, 0.0  ;;  %v1113_v0 = vmax.f32 %v1097_v56, 0.0  ;;  %v1102_v2 = vadd.f32 %v1453_v26, %v1079_v57 }
 0x25f   : > { %v1093_v41 = vadd.f32 %v1453_v26, %v1070_v36  ;;  %1125 = vst [vmem:[%s2158_s16 + $0x20] sm:$0xff] %v1108_v48  ;;  %v1111_v59 = vmax.f32 %v1095_v49, 0.0  ;;  %1127 = vst [vmem:[%s2158_s16 + $0x30] sm:$0xff] %v1110_v54  ;;  %v1101_v1 = vadd.f32 %v1453_v26, %v1078_v52  ;;  %v1114_v3 = vmax.f32 %v1098_v60, 0.0 }
 0x260   : > { %v1115_v4 = vmax.f32 %v1099_v61, 0.0  ;;  %v1116_v5 = vmax.f32 %v1100_v62, 0.0  ;;  %v1103_v6 = vadd.f32 %v1453_v26, %v1080_v58  ;;  %1129 = vst [vmem:[%s2158_s16 + $0x40] sm:$0xff] %v1112_v63  ;;  %1130 = vst [vmem:[%s2158_s16 + $0x48] sm:$0xff] %v1113_v0  ;;  %v1118_v8 = vmax.f32 %v1102_v2, 0.0 }
 0x261   : > { %v1109_v53 = vmax.f32 %v1093_v41, 0.0  ;;  %1128 = vst [vmem:[%s2158_s16 + $0x38] sm:$0xff] %v1111_v59  ;;  %v1117_v7 = vmax.f32 %v1101_v1, 0.0  ;;  %1131 = vst [vmem:[%s2158_s16 + $0x50] sm:$0xff] %v1114_v3 }
 0x262   : > { %1132 = vst [vmem:[%s2158_s16 + $0x58] sm:$0xff] %v1115_v4  ;;  %1133 = vst [vmem:[%s2158_s16 + $0x60] sm:$0xff] %v1116_v5  ;;  %v1119_v9 = vmax.f32 %v1103_v6, 0.0 }
 0x263   : > { %1126 = vst [vmem:[%s2158_s16 + $0x28] sm:$0xff] %v1109_v53  ;;  %1134 = vst [vmem:[%s2158_s16 + $0x68] sm:$0xff] %v1117_v7 }
 0x264   : > { %1135 = vst [vmem:[%s2158_s16 + $0x70] sm:$0xff] %v1118_v8  ;;  %1136 = vst [vmem:[%s2158_s16 + $0x78] sm:$0xff] %v1119_v9 }
 0x265 PF: > { %p1138_p5 = scmp.eq.s32.totalorder %s1839_s27, 1  ;;  %p1137_p6 = scmp.eq.s32.totalorder %s1843_s28, 4 }
 0x267   : > { %p1139_p7 = pnand %p1138_p5, %p1060_p3 }
 0x269   : > { %p1140_p8 = pneg %p1139_p7 }
 0x26b   : > { %p1141_p9 = pnand %p1140_p8, %p1137_p6 }
 0x26d   : > { %1144 = sbr.rel (%p1141_p9) target bundleno = 1052 (0x41c), region = 109 }
 0x272   : > { %v1178_v10 = vld [vmem:[#allocation2 + $0xf8] sm:$0xff]  ;;  %v1177_v12 = vld [vmem:[#allocation2 + $0xf0] sm:$0xff]  ;;  %v1862_v14 = vmov 0.0   ;;  %v1176_v15 = vld [vmem:[#allocation2 + $0xe8] sm:$0xff]  ;;  %vm1863_vm0 = vmmov 0  }
 0x273   : > { %v1162_v11 = vld [vmem:[#allocation2 + $0x78] sm:$0xff]  ;;  %1499 = vmatprep.subr.mxu0 %v1178_v10  ;;  %v1161_v13 = vld [vmem:[#allocation2 + $0x70] sm:$0xff]  ;;  %1631 = vmatprep.subr.mxu1 %v1862_v14  ;;  %v1160_v16 = vld [vmem:[#allocation2 + $0x68] sm:$0xff] }
 0x274   : > { %1500 = vmatpush3.msra.mxu0 %v1162_v11  ;;  %v1175_v17 = vld [vmem:[#allocation2 + $0xe0] sm:$0xff]  ;;  %v1174_v19 = vld [vmem:[#allocation2 + $0xd8] sm:$0xff]  ;;  %v1173_v21 = vld [vmem:[#allocation2 + $0xd0] sm:$0xff]  ;;  %1663 = vmatprep.mubr.msk.f32.mxu1 %vm1863_vm0, %v1862_v14 }
 0x275   : > { %1501 = vmatprep.subr.mxu0 %v1177_v12  ;;  %v1159_v18 = vld [vmem:[#allocation2 + $0x60] sm:$0xff]  ;;  %v1158_v20 = vld [vmem:[#allocation2 + $0x58] sm:$0xff]  ;;  %v1157_v22 = vld [vmem:[#allocation2 + $0x50] sm:$0xff] }
 0x276   : > { %1502 = vmatpush3.msra.mxu0 %v1161_v13  ;;  %v1172_v23 = vld [vmem:[#allocation2 + $0xc8] sm:$0xff]  ;;  %v1264_v26 = vld [vmem:[%s2289_s5 + $0x78] sm:$0xff]  ;;  %v1263_v27 = vld [vmem:[%s2289_s5 + $0x70] sm:$0xff] }
 0x277   : > { %1503 = vmatprep.subr.mxu0 %v1176_v15  ;;  %v1146_v24 = vld [vmem:[%s2288_s4 + $0x8] sm:$0xff]  ;;  %v1171_v28 = vld [vmem:[#allocation2 + $0xc0] sm:$0xff]  ;;  %1632 = vmatpush3.msra.mxu1 %v1264_v26  ;;  %v1170_v31 = vld [vmem:[#allocation2 + $0xb8] sm:$0xff] }
 0x278   : > { %1504 = vmatpush3.msra.mxu0 %v1160_v16  ;;  %v1156_v25 = vld [vmem:[#allocation2 + $0x48] sm:$0xff]  ;;  %1243 = vmatprep.mubr.f32.mxu0 %v1146_v24  ;;  %v1155_v29 = vld [vmem:[#allocation2 + $0x40] sm:$0xff]  ;;  %v1154_v32 = vld [vmem:[#allocation2 + $0x38] sm:$0xff] }
 0x279   : > { %1505 = vmatprep.subr.mxu0 %v1175_v17  ;;  %1633 = vmatprep.subr.mxu1 %v1862_v14  ;;  %v1262_v30 = vld [vmem:[%s2289_s5 + $0x68] sm:$0xff]  ;;  %v1261_v33 = vld [vmem:[%s2289_s5 + $0x60] sm:$0xff]  ;;  %v1169_v34 = vld [vmem:[#allocation2 + $0xb0] sm:$0xff] }
 0x27a   : > { %1506 = vmatpush3.msra.mxu0 %v1159_v18  ;;  %1634 = vmatpush3.msra.mxu1 %v1263_v27  ;;  %v1153_v35 = vld [vmem:[#allocation2 + $0x30] sm:$0xff]  ;;  %v1260_v36 = vld [vmem:[%s2289_s5 + $0x58] sm:$0xff]  ;;  %v1168_v37 = vld [vmem:[#allocation2 + $0xa8] sm:$0xff] }
 0x27b   : > { %1507 = vmatprep.subr.mxu0 %v1174_v19  ;;  %1635 = vmatprep.subr.mxu1 %v1862_v14  ;;  %v1152_v38 = vld [vmem:[#allocation2 + $0x28] sm:$0xff]  ;;  %v1259_v39 = vld [vmem:[%s2289_s5 + $0x50] sm:$0xff]  ;;  %v1167_v40 = vld [vmem:[#allocation2 + $0xa0] sm:$0xff] }
 0x27c   : > { %1508 = vmatpush3.msra.mxu0 %v1158_v20  ;;  %1636 = vmatpush3.msra.mxu1 %v1262_v30  ;;  %v1151_v41 = vld [vmem:[#allocation2 + $0x20] sm:$0xff]  ;;  %v1258_v42 = vld [vmem:[%s2289_s5 + $0x48] sm:$0xff]  ;;  %v1166_v43 = vld [vmem:[#allocation2 + $0x98] sm:$0xff] }
 0x27d   : > { %1509 = vmatprep.subr.mxu0 %v1173_v21  ;;  %1637 = vmatprep.subr.mxu1 %v1862_v14  ;;  %v1150_v44 = vld [vmem:[#allocation2 + $0x18] sm:$0xff]  ;;  %v1257_v45 = vld [vmem:[%s2289_s5 + $0x40] sm:$0xff]  ;;  %v1165_v46 = vld [vmem:[#allocation2 + $0x90] sm:$0xff] }
 0x27e   : > { %1510 = vmatpush3.msra.mxu0 %v1157_v22  ;;  %1638 = vmatpush3.msra.mxu1 %v1261_v33  ;;  %v1149_v47 = vld [vmem:[#allocation2 + $0x10] sm:$0xff]  ;;  %v1256_v48 = vld [vmem:[%s2289_s5 + $0x38] sm:$0xff]  ;;  %v1164_v49 = vld [vmem:[#allocation2 + $0x88] sm:$0xff] }
 0x27f   : > { %1511 = vmatprep.subr.mxu0 %v1172_v23  ;;  %1639 = vmatprep.subr.mxu1 %v1862_v14  ;;  %v1148_v50 = vld [vmem:[#allocation2 + $0x8] sm:$0xff]  ;;  %v1255_v51 = vld [vmem:[%s2289_s5 + $0x30] sm:$0xff]  ;;  %v1163_v52 = vld [vmem:[#allocation2 + $0x80] sm:$0xff] }
 0x280   : > { %1512 = vmatpush3.msra.mxu0 %v1156_v25  ;;  %1640 = vmatpush3.msra.mxu1 %v1260_v36  ;;  %v1147_v53 = vld [vmem:[#allocation2] sm:$0xff]  ;;  %v1254_v54 = vld [vmem:[%s2289_s5 + $0x28] sm:$0xff]  ;;  %v1252_v57 = vld [vmem:[%s2289_s5 + $0x18] sm:$0xff] }
 0x281   : > { %1513 = vmatprep.subr.mxu0 %v1171_v28  ;;  %1641 = vmatprep.subr.mxu1 %v1862_v14  ;;  %v1145_v55 = vld [vmem:[%s2288_s4] sm:$0xff]  ;;  %v1251_v58 = vld [vmem:[%s2289_s5 + $0x10] sm:$0xff]  ;;  %v1250_v59 = vld [vmem:[%s2289_s5 + $0x8] sm:$0xff] }
 0x282   : > { %1514 = vmatpush3.msra.mxu0 %v1155_v29  ;;  %1642 = vmatpush3.msra.mxu1 %v1259_v39  ;;  %v1253_v56 = vld [vmem:[%s2289_s5 + $0x20] sm:$0xff] }
 0x283   : > { %1515 = vmatprep.subr.mxu0 %v1170_v31  ;;  %1643 = vmatprep.subr.mxu1 %v1862_v14  ;;  %v1249_v60 = vld [vmem:[%s2289_s5] sm:$0xff] }
 0x284   : > { %1516 = vmatpush3.msra.mxu0 %v1154_v32  ;;  %1644 = vmatpush3.msra.mxu1 %v1258_v42  ;;  %v1454_v0 = vld [vmem:[%s2290_s6] ss:$0 sm:$0xff] }
 0x285   : > { %1517 = vmatprep.subr.mxu0 %v1169_v34  ;;  %1645 = vmatprep.subr.mxu1 %v1862_v14 }
 0x286   : > { %1518 = vmatpush3.msra.mxu0 %v1153_v35  ;;  %1646 = vmatpush3.msra.mxu1 %v1257_v45 }
 0x287   : > { %1519 = vmatprep.subr.mxu0 %v1168_v37  ;;  %1647 = vmatprep.subr.mxu1 %v1862_v14 }
 0x288   : > { %1520 = vmatpush3.msra.mxu0 %v1152_v38  ;;  %1648 = vmatpush3.msra.mxu1 %v1256_v48 }
 0x289   : > { %1521 = vmatprep.subr.mxu0 %v1167_v40  ;;  %1649 = vmatprep.subr.mxu1 %v1862_v14 }
 0x28a   : > { %1522 = vmatpush3.msra.mxu0 %v1151_v41  ;;  %1650 = vmatpush3.msra.mxu1 %v1255_v51 }
 0x28b   : > { %1523 = vmatprep.subr.mxu0 %v1166_v43  ;;  %1651 = vmatprep.subr.mxu1 %v1862_v14 }
 0x28c   : > { %1524 = vmatpush3.msra.mxu0 %v1150_v44  ;;  %1652 = vmatpush3.msra.mxu1 %v1254_v54 }
 0x28d   : > { %1525 = vmatprep.subr.mxu0 %v1165_v46  ;;  %1653 = vmatprep.subr.mxu1 %v1862_v14 }
 0x28e   : > { %1526 = vmatpush3.msra.mxu0 %v1149_v47  ;;  %1654 = vmatpush3.msra.mxu1 %v1253_v56 }
 0x28f   : > { %1527 = vmatprep.subr.mxu0 %v1164_v49  ;;  %1655 = vmatprep.subr.mxu1 %v1862_v14 }
 0x290   : > { %1528 = vmatpush3.msra.mxu0 %v1148_v50  ;;  %1656 = vmatpush3.msra.mxu1 %v1252_v57 }
 0x291   : > { %1529 = vmatprep.subr.mxu0 %v1163_v52  ;;  %1657 = vmatprep.subr.mxu1 %v1862_v14 }
 0x292   : > { %1530 = vmatpush3.msra.mxu0 %v1147_v53  ;;  %1658 = vmatpush3.msra.mxu1 %v1251_v58 }
 0x293   : > { %1244 = vmatmul.mubr.f32.vlgmr.msra.gmra.mxu0 %v1145_v55  ;;  %1659 = vmatprep.subr.mxu1 %v1862_v14 }
 0x294   : > { %1660 = vmatpush3.msra.mxu1 %v1250_v59 }
 0x295   : > { %1661 = vmatprep.subr.mxu1 %v1862_v14 }
 0x296   : > { %1662 = vmatpush3.msra.mxu1 %v1249_v60 }
 0x353   : > { %v1531_v61 = vpop.f32.mrf.mxu0 }
 0x355   : > { %v1532_v62 = vpop.f32.mrf.mxu0 }
 0x356   : > { %v1533_v63 = vadd.f32 %v1532_v62, %v1531_v61 }
 0x358   : > { %1664 = vmatmul.mubr.f32.vlgmr.msra.gmra.mxu1 %v1533_v63 }
 0x418   : > { %v1338_v1 = vpop.f32.mrf.mxu1 }
 0x419   : > { %v1339_v2 = vadd.f32 %v1454_v0, %v1338_v1 }
 0x41a   : > { %v1665_v3 = vpop.f32.mrf.mxu1 }
 0x41b   : > { %1342 = vst [vmem:[%s2291_s7] sm:$0xff] %v1339_v2 }
 0x41c PF: > { %s17_s9 = sadd.s32 1, %s1859_s9   ;;  %s2297_s23 = sld [smem:[#allocation6_spill]] }
 0x41d   : > { %p14_p10 = scmp.ge.s32.totalorder %s17_s9, 22   ;;  %s2298_s14 = sld [smem:[#allocation7_spill]] }
 0x41e   : > { %s2299_s24 = smov %s1831_s25  ;;  %s2300_s25 = smov %s1969_s17 }
 0x41f   : > { %s2301_s26 = smov %s1847_s29  ;;  %s2302_s27 = smov %s1851_s30 }
 0x420   : > { %s2303_s28 = smov %s1855_s8  ;;  %s2304_s29 = smov %s2308_s10 }
 0x421   :  { %16 = sbr.rel (!%p14_p10) target bundleno = 7 (0x7), region = 148 }
 0x422   : > { %s2305_s30 = smov %s2297_s23 }
 0x423   : > { %s2306_s8 = smov %s2298_s14 }

</bundles_post_ra>
